<compile_context>
chip_gen: v7x
topology: tpu7x:2x2x1
jax: 0.10.0
libtpu: 0.0.40
codegen_flags: <defaults>
</compile_context>

<pallas_src>
import jax
import jax.numpy as jnp
from jax.experimental import pallas as pl
from jax.experimental.pallas import tpu as pltpu

_LANE = 128
_SUBLANE = 8
_TARGET_BLOCK_BYTES = 2 << 20      # ~2 MiB per block buffer (per review: 1-4 MiB)
_MEGACORE_MIN_BYTES = 512 << 10    # only bother splitting a 1-step grid above this


def _swish_kernel(beta_ref, x_ref, o_ref):
    """o = x * sigmoid(beta * x), computed in f32, stored in o_ref.dtype."""
    x = x_ref[...].astype(jnp.float32)
    beta = beta_ref[0]
    # sigmoid(z) = 0.5 * (tanh(z / 2) + 1): numerically stable, tanh -> EUP slot.
    sig = 0.5 * (jnp.tanh(0.5 * beta * x) + 1.0)
    o_ref[...] = (x * sig).astype(o_ref.dtype)


def _swish_2d(x2d, beta_arr):
    """Run the fused kernel over a 2D [R, C] slab (C is the lane-major dim)."""
    R, C = x2d.shape
    itemsize = jnp.dtype(x2d.dtype).itemsize

    # Column tile: full width unless a single 8-row stripe would blow the
    # ~2 MiB block budget (then split columns on 128-lane boundaries).
    if _SUBLANE * C * itemsize <= _TARGET_BLOCK_BYTES:
        bc = C
    else:
        bc = max(_LANE,
                 (_TARGET_BLOCK_BYTES // (_SUBLANE * itemsize)) // _LANE * _LANE)

    # Row tile: multiple of 8 sublanes, sized so one block is ~_TARGET_BLOCK_BYTES
    # regardless of dtype (bf16/int8 automatically get proportionally more rows).
    br = max(_SUBLANE,
             (_TARGET_BLOCK_BYTES // (bc * itemsize)) // _SUBLANE * _SUBLANE)
    if br >= R:
        if R >= 2 * _SUBLANE and R * C * itemsize > _MEGACORE_MIN_BYTES:
            # Enough work to be worth >=2 grid steps (v7x megacore sharding).
            br = ((pl.cdiv(R, 2) + _SUBLANE - 1) // _SUBLANE) * _SUBLANE
        else:
            br = R  # full dim: always a legal block size, single step is fine

    grid = (pl.cdiv(R, br), pl.cdiv(C, bc))
    return pl.pallas_call(
        _swish_kernel,
        out_shape=jax.ShapeDtypeStruct((R, C), x2d.dtype),
        grid=grid,
        in_specs=[
            pl.BlockSpec(memory_space=pltpu.MemorySpace.SMEM),   # beta scalar
            pl.BlockSpec((br, bc), lambda i, j: (i, j)),         # x tile
        ],
        out_specs=pl.BlockSpec((br, bc), lambda i, j: (i, j)),
        compiler_params=pltpu.CompilerParams(
            dimension_semantics=("parallel", "parallel")),       # megacore on v7x
    )(beta_arr, x2d)


def swish(x, beta):
    """Swish forward: x * sigmoid(beta * x). Any input shape/dtype."""
    if x.size == 0:                       # empty-input guard
        return x

    beta_arr = jnp.reshape(jnp.asarray(beta, jnp.float32), (1,))

    # Fast path (no copies): last dim already lane-aligned -> tile in place.
    if x.ndim >= 2 and x.shape[-1] % _LANE == 0:
        x2d = x.reshape(-1, x.shape[-1])  # collapse leading dims: free reshape
        return _swish_2d(x2d, beta_arr).reshape(x.shape)

    # General path: flatten to a lane-dense [rows, 128] slab. Pad only the
    # sub-128-element tail (swish(0) == 0, so zero padding is safe).
    flat = x.reshape(-1)
    n = flat.shape[0]
    rem = n % _LANE
    if rem:
        flat = jnp.pad(flat, (0, _LANE - rem))
    x2d = flat.reshape(-1, _LANE)

    out = _swish_2d(x2d, beta_arr).reshape(-1)
    if rem:
        out = out[:n]
    return out.reshape(x.shape)


if __name__ == "__main__":
    key = jax.random.PRNGKey(0)
    x = jax.random.normal(key, (2, 4, 16, 16), dtype=jnp.float32)
    beta = jnp.float32(0.5)   # nn.Parameter(torch.tensor(0.5))

    out = jax.block_until_ready(swish(x, beta))

    ref = x * jax.nn.sigmoid(beta * x)
    assert out.shape == x.shape
    assert out.dtype == x.dtype
    assert bool(jnp.all(jnp.abs(out - ref) < 1e-5))
    print("KERNEL_OK")
</pallas_src>

<mosaic_0001>
module attributes {stable_mosaic.version = 11 : i64} {
  func.func @_swish_kernel(%arg0: i32, %arg1: i32, %arg2: memref<1xf32, #tpu.memory_space<smem>>, %arg3: memref<16x128xf32, #tpu.memory_space<vmem>>, %arg4: memref<16x128xf32, #tpu.memory_space<vmem>>) attributes {dimension_semantics = [#tpu.dimension_semantics<parallel>, #tpu.dimension_semantics<parallel>], iteration_bounds = array<i64: 1, 1>, scalar_prefetch = 0 : i64, scratch_operands = 0 : i64, tpu.core_type = #tpu.core_type<tc>, window_params = [{transform_indices = @transform_0, window_bounds = array<i64: 1>}, {transform_indices = @transform_1, window_bounds = array<i64: 16, 128>}, {transform_indices = @transform_2, window_bounds = array<i64: 16, 128>}]} {
    %c0 = arith.constant 0 : index
    %c0_0 = arith.constant 0 : index
    %0 = vector.load %arg3[%c0, %c0_0] : memref<16x128xf32, #tpu.memory_space<vmem>>, vector<16x128xf32>
    %c0_1 = arith.constant 0 : index
    %1 = memref.load %arg2[%c0_1] : memref<1xf32, #tpu.memory_space<smem>>
    %cst = arith.constant 5.000000e-01 : f32
    %2 = arith.mulf %cst, %1 : f32
    %3 = vector.broadcast %2 : f32 to vector<16x128xf32>
    %4 = arith.mulf %3, %0 : vector<16x128xf32>
    %5 = math.tanh %4 : vector<16x128xf32>
    %cst_2 = arith.constant 1.000000e+00 : f32
    %6 = vector.broadcast %cst_2 : f32 to vector<16x128xf32>
    %7 = arith.addf %5, %6 : vector<16x128xf32>
    %cst_3 = arith.constant 5.000000e-01 : f32
    %8 = vector.broadcast %cst_3 : f32 to vector<16x128xf32>
    %9 = arith.mulf %8, %7 : vector<16x128xf32>
    %10 = arith.mulf %0, %9 : vector<16x128xf32>
    %c0_4 = arith.constant 0 : index
    %c0_5 = arith.constant 0 : index
    %11 = vector.load %arg4[%c0_4, %c0_5] : memref<16x128xf32, #tpu.memory_space<vmem>>, vector<16x128xf32>
    tpu.vector_store %arg4[%c0_4, %c0_5], %10 {strides = array<i32>} : memref<16x128xf32, #tpu.memory_space<vmem>>, vector<16x128xf32>,
    return
  }
  func.func @transform_0(%arg0: i32, %arg1: i32) -> i32 {
    %c0_i32 = arith.constant 0 : i32
    %c0_i32_0 = arith.constant 0 : i32
    return %c0_i32 : i32
  }
  func.func @transform_1(%arg0: i32, %arg1: i32) -> (i32, i32) {
    %c0_i32 = arith.constant 0 : i32
    return %arg0, %arg1 : i32, i32
  }
  func.func @transform_2(%arg0: i32, %arg1: i32) -> (i32, i32) {
    %c0_i32 = arith.constant 0 : i32
    return %arg0, %arg1 : i32, i32
  }
}

</mosaic_0001>

<bundles_post_ra>
// kernel: tpu_custom_call.1
= control target key start
LH: loop header
LB: loop body
LE: loop exit
PB: predicated region body
PF: predicated region fallthrough
CT: control target
= control target key end

     0   :  { %8 = vsyncpa [#allocation4], 0  ;;  %s169_s0 = inlined_call_operand.<no memory space> [shape: f32[1], index: 0, kind: input, shape index: {}]   ;;  %s170_s1 = inlined_call_operand.hbm [shape: f32[16,128], index: 1, kind: input, shape index: {}]   ;;  %s171_s2 = inlined_call_operand.hbm [shape: f32[16,128], index: 2, kind: output, shape index: {}]  }
   0x1   :  { %9 = vsyncpa [#allocation5], 0  ;;  %s117_s9 = smov [#allocation3]   ;;  %s69_s13 = scalar_lea.hbm %s170_s1, 256 }
   0x2   :  { %s17_s10 = sshll.u32 %s117_s9, 4  ;;  %p70_p0 = scmp.ne.s32.totalorder %s170_s1, %s69_s13  ;;  %s18_s10 = int_to_ptr.vmem [resolvable:$true] %s17_s10 }
   0x3   :  { %p73_p1 = scmp.lt.u32.totalorder %s69_s13, %s170_s1 }
   0x5   :  { %p75_p2 = pnand %p73_p1, %p70_p0 }
   0x7   :  { %78 = shalt.err (!%p75_p2)
}
   0x8   :  { %s79_s18 = scalar_lea.vmem %s18_s10, 256  ;;  %p84_p4 = scmp.lt.s32.totalorder %s18_s10, %s18_s10 }
   0x9   :  { %p80_p3 = scmp.ne.s32.totalorder %s18_s10, %s79_s18  ;;  %p85_p5 = scmp.lt.s32.totalorder %s79_s18, %s79_s18 }
   0xb   :  { %p86_p6 = por %p85_p5, %p84_p4 }
   0xd   :  { %p87_p7 = pnand %p86_p6, %p80_p3 }
   0xf   :  { %90 = shalt.err (!%p87_p7)
}
  0x10   :  { %s118_s19 = smov 128   ;;  %s119_s20 = smov 8  }
  0x11   :  { %23 = dma.hbm_to_vmem [thread:$0]  %s170_s1, 256, %s18_s10, [#allocation4], %s118_s19, %s118_s19, %s119_s20  }
  0x12   :  { %113 = dma.done.wait [#allocation4], 256  }
  0x13   :  { %114 = vsyncadd [#allocation4], 4294967040  ;;  %s30_s25 = smul.f32 0.5, %s169_s0  ;;  %v27_v1 = vld [vmem:[#allocation3] sm:$0xff]  ;;  %v28_v2 = vld [vmem:[#allocation3 + $0x8] sm:$0xff]  ;;  %s120_s26 = smov [#allocation6]  }
  0x14   :  { %s49_s1 = sshll.u32 %s120_s26, 4  ;;  %s50_s1 = int_to_ptr.vmem [resolvable:$true] %s49_s1 }
  0x15   :  { %v31_v0 = vstv %s30_s25  ;;  %s91_s0 = scalar_lea.vmem %s50_s1, 256  ;;  %p96_p9 = scmp.lt.s32.totalorder %s50_s1, %s50_s1 }
  0x16   :  { %v32_v3 = vmul.f32 %v31_v0, %v27_v1  ;;  %v33_v4 = vmul.f32 %v31_v0, %v28_v2  ;;  %p92_p8 = scmp.ne.s32.totalorder %s50_s1, %s91_s0  ;;  %p97_p10 = scmp.lt.s32.totalorder %s91_s0, %s91_s0 }
  0x18   :  { %65 = vtanh.f32 %v32_v3  ;;  %p98_p11 = por %p97_p10, %p96_p9 }
  0x19   :  { %67 = vtanh.f32 %v33_v4 }
  0x1a   :  { %p99_p12 = pnand %p98_p11, %p92_p8 }
  0x22   :  { %v66_v5 = vpop.eup %65 }
  0x23   :  { %v68_v6 = vpop.eup %67  ;;  %v36_v7 = vadd.f32 1.0, %v66_v5 }
  0x24   :  { %v37_v8 = vadd.f32 1.0, %v68_v6 }
  0x25   :  { %v38_v9 = vmul.f32 0.5, %v36_v7 }
  0x26   :  { %v39_v10 = vmul.f32 0.5, %v37_v8 }
  0x27   :  { %v40_v11 = vmul.f32 %v38_v9, %v27_v1 }
  0x28   :  { %v41_v12 = vmul.f32 %v39_v10, %v28_v2 }
  0x29   :  { %42 = vst [vmem:[#allocation6] sm:$0xff] %v40_v11 }
  0x2a   :  { %43 = vst [vmem:[#allocation6 + $0x8] sm:$0xff] %v41_v12 }
  0x2b   :  { %102 = shalt.err (!%p99_p12)
}
  0x2c   :  { %s103_s29 = scalar_lea.hbm %s171_s2, 256 }
  0x2d   :  { %p104_p13 = scmp.ne.s32.totalorder %s171_s2, %s103_s29  ;;  %p107_p0 = scmp.lt.u32.totalorder %s103_s29, %s171_s2 }
  0x2f   :  { %p109_p1 = pnand %p107_p0, %p104_p13 }
  0x31   :  { %112 = shalt.err (!%p109_p1)
}
  0x32   :  { %55 = dma.vmem_to_hbm [thread:$0]  %s50_s1, 256, %s171_s2, [#allocation5], %s118_s19, %s118_s19, %s119_s20  }
  0x33   :  { %115 = dma.done.wait [#allocation5], 256  }
  0x34   :  { %116 = vsyncadd [#allocation5], 4294967040 }
  0x35   :  { %59 = vsyncpa [#allocation4], 1 }
  0x36   :  { %60 = vsyncpa [#allocation5], 1 }

</bundles_post_ra>
